<compile_context>
chip_gen: v5e
topology: v5e:2x2
jax: 0.10.0
libtpu: 0.0.40
codegen_flags: <defaults>
</compile_context>

<pallas_src>
import jax
import jax.numpy as jnp
from jax import lax
from jax.experimental import pallas as pl
from jax.experimental.pallas import tpu as pltpu

# ---------------- config ----------------
B = 32                        # batch (= the module's default fit() batch_size)
L = 16                        # sequence length
BLK = B * L                   # lanes per (single) kernel block = 512
N_FEATURES = 6
STATIC = 2                    # static_features_to_add
C_IN = N_FEATURES - STATIC    # conv input channels = 4
C_PAD = 8                     # temporal channels padded to the f32 sublane tile
N_FILTERS = (8, 8)            # conv out channels per layer (== C_PAD for this config)
K = 3                         # kernel_size
DILATION = (1, 2)
HIDDEN = (16, 1)              # n_hidden_dense

IN_ROWS = C_PAD + STATIC      # packed activation slab rows: 8 temporal (4 real) + 2 static
W_COLS = K * C_PAD            # 24
DENSE_ROW0 = 2 * C_PAD        # fw0/fb0 start row in the weight slab
DENSE_ROW1 = DENSE_ROW0 + HIDDEN[0]   # fw1/fb1 row
W_ROWS = 40                   # 33 used rows (2*8 conv + 16 fw0 + 1 fw1), padded to 8-multiple

assert BLK % 128 == 0
assert N_FILTERS == (C_PAD, C_PAD)
assert (K - 1) * max(DILATION) < L          # whole receptive field inside one sequence
assert HIDDEN == (16, 1)


# ---------------- Pallas kernel ----------------
def dcn_kernel(inp_ref, w_ref, out_ref):
    f32 = jnp.float32

    h = inp_ref[0:C_PAD, :]                       # (8, BLK) temporal (4 real + 4 zero pad)
    stat = inp_ref[C_PAD:C_PAD + STATIC, :]       # (2, BLK) static feats, broadcast over t

    # Time index t within each sequence, built in-kernel (lanes are laid out as b*L + t).
    t = lax.broadcasted_iota(jnp.int32, (C_PAD, BLK), 1) % L

    def shifted(x, s):
        # y[:, b*L + t] = x[:, b*L + t + s] if t + s < L else 0  (right-zero-padded causal shift)
        if s == 0:
            return x
        rolled = pltpu.roll(x, shift=BLK - s, axis=1)   # XLU: rolled[:, q] = x[:, (q + s) % BLK]
        return jnp.where(t < L - s, rolled, 0.0)        # mask built & consumed per tap

    # Conv layers: K per-tap (8,8)x(8,BLK) MXU dots summed, ReLU once (no im2col concat).
    for layer, d in enumerate(DILATION):
        acc = None
        for j in range(K):
            w_tap = w_ref[layer * C_PAD:(layer + 1) * C_PAD,
                          j * C_PAD:(j + 1) * C_PAD]                       # (8, 8)
            contrib = jnp.dot(w_tap, shifted(h, j * d),
                              preferred_element_type=f32)                  # (8, BLK)
            acc = contrib if acc is None else acc + contrib
        h = jnp.maximum(acc, 0.0)

    # Dense head, lane-dense at every time position (wrapper keeps only t == 0).
    # fc0 bias folded into the matmul via a ones row on the (already needed) concat.
    ones = jnp.ones((1, BLK), f32)
    dense_in = jnp.concatenate([h, stat, ones], axis=0)                    # (11, BLK)
    fw0b = w_ref[DENSE_ROW0:DENSE_ROW0 + HIDDEN[0], 0:C_PAD + STATIC + 1]  # (16, 11) incl. bias col
    z = jnp.maximum(jnp.dot(fw0b, dense_in, preferred_element_type=f32), 0.0)

    # fc1 bias kept as a cheap (1,BLK) broadcast-add (a 17-row concat would cost more).
    fw1 = w_ref[DENSE_ROW1:DENSE_ROW1 + 1, 0:HIDDEN[0]]                    # (1, 16)
    fb1 = w_ref[DENSE_ROW1:DENSE_ROW1 + 1, HIDDEN[0]:HIDDEN[0] + 1]        # (1, 1)
    out_ref[...] = jnp.dot(fw1, z, preferred_element_type=f32) + fb1       # (1, BLK)


# ---------------- one-time parameter packing (hoisted out of the forward path) ----------------
def pack_params(params):
    """Pack all weights/biases into one (W_ROWS, W_COLS) f32 slab. Call once at init."""
    w0, w1, fw0, fb0, fw1, fb1 = params
    slab = jnp.zeros((W_ROWS, W_COLS), jnp.float32)

    # Conv taps: layer l in rows l*8:(l+1)*8, tap j in cols j*8:(j+1)*8; layer-0 Cin padded 4->8.
    w0p = jnp.zeros((N_FILTERS[0], C_PAD, K), jnp.float32).at[:, :C_IN, :].set(w0)
    for layer, w in enumerate((w0p, w1)):
        for j in range(K):
            slab = slab.at[layer * C_PAD:(layer + 1) * C_PAD,
                           j * C_PAD:(j + 1) * C_PAD].set(w[:, :, j])

    # Dense: fw0 (16,10) + bias col 10; fw1 (1,16) + bias col 16.
    slab = slab.at[DENSE_ROW0:DENSE_ROW0 + HIDDEN[0], 0:C_PAD + STATIC].set(fw0)
    slab = slab.at[DENSE_ROW0:DENSE_ROW0 + HIDDEN[0], C_PAD + STATIC].set(fb0)
    slab = slab.at[DENSE_ROW1, 0:HIDDEN[0]].set(fw1[0])
    slab = slab.at[DENSE_ROW1, HIDDEN[0]].set(fb1[0])
    return slab


# ---------------- forward wrapper (input layout glue + one pallas_call) ----------------
@jax.jit
def dcn_forward(x, x_static, wslab):
    """x: (B, C_IN, L) float32 (NCL, like PyTorch Conv1d); x_static: (B, STATIC);
    wslab: packed (W_ROWS, W_COLS) weight slab from pack_params."""
    BL = B * L

    # Activation slab (IN_ROWS, B*L): temporal channels (padded to 8) + static rows.
    h0 = jnp.transpose(x, (1, 0, 2)).reshape(C_IN, BL)                 # (4, BL), lanes = b*L + t
    xs_bl = jnp.repeat(jnp.transpose(x_static, (1, 0)), L, axis=1)     # (2, BL)
    inp = jnp.concatenate(
        [h0, jnp.zeros((C_PAD - C_IN, BL), jnp.float32), xs_bl], axis=0)   # (10, BL)

    out_bl = pl.pallas_call(
        dcn_kernel,
        out_shape=jax.ShapeDtypeStruct((HIDDEN[-1], BL), jnp.float32),
        grid=(1,),                                     # whole problem fits one block
        in_specs=[
            pl.BlockSpec((IN_ROWS, BLK), lambda i: (0, 0)),
            pl.BlockSpec((W_ROWS, W_COLS), lambda i: (0, 0)),
        ],
        out_specs=pl.BlockSpec((HIDDEN[-1], BLK), lambda i: (0, 0)),
    )(inp, wslab)

    # t = 0 selection (pure layout): keep column b*L for every batch b.
    return jnp.transpose(out_bl.reshape(HIDDEN[-1], B, L)[:, :, 0], (1, 0))   # (B, 1)


# ---------------- pure-JAX reference (for correctness check) ----------------
def dcn_reference(x, x_static, params):
    w0, w1, fw0, fb0, fw1, fb1 = params
    h = x.astype(jnp.float32)
    for w, d in ((w0, DILATION[0]), (w1, DILATION[1])):
        hp = jnp.pad(h, ((0, 0), (0, 0), (0, (K - 1) * d)))   # F.pad(x, (0, (K-1)*d))
        out = jnp.zeros((B, w.shape[0], L), jnp.float32)
        for j in range(K):
            xsh = lax.dynamic_slice_in_dim(hp, j * d, L, axis=2)
            out = out + jnp.einsum('oc,bcl->bol', w[:, :, j], xsh)
        h = jnp.maximum(out, 0.0)
    feat = h[:, :, 0]
    z = jnp.concatenate([feat, x_static], axis=1)
    z = jnp.maximum(z @ fw0.T + fb0, 0.0)
    return z @ fw1.T + fb1


# ---------------- main ----------------
if __name__ == "__main__":
    key = jax.random.PRNGKey(0)
    ks = jax.random.split(key, 8)

    # deterministic synthetic parameters (conv/linear weights ~ N(0, 0.01), like init_weights)
    w0 = 0.01 * jax.random.normal(ks[0], (N_FILTERS[0], C_IN, K), jnp.float32)
    w1 = 0.01 * jax.random.normal(ks[1], (N_FILTERS[1], N_FILTERS[0], K), jnp.float32)
    fw0 = 0.01 * jax.random.normal(ks[2], (HIDDEN[0], N_FILTERS[-1] + STATIC), jnp.float32)
    fb0 = 0.01 * jax.random.normal(ks[3], (HIDDEN[0],), jnp.float32)
    fw1 = 0.01 * jax.random.normal(ks[4], (HIDDEN[1], HIDDEN[0]), jnp.float32)
    fb1 = 0.01 * jax.random.normal(ks[5], (HIDDEN[1],), jnp.float32)
    params = (w0, w1, fw0, fb0, fw1, fb1)

    # one-time weight packing (NOT part of the per-forward path)
    wslab = jax.block_until_ready(pack_params(params))

    # inputs (NCL layout like PyTorch)
    x = jax.random.normal(ks[6], (B, C_IN, L), jnp.float32)
    x_static = jax.random.normal(ks[7], (B, STATIC), jnp.float32)

    out = jax.block_until_ready(dcn_forward(x, x_static, wslab))
    ref = jax.block_until_ready(dcn_reference(x, x_static, params))
    assert out.shape == (B, HIDDEN[-1]), out.shape
    assert jnp.allclose(out, ref, rtol=2e-4, atol=1e-6), (out, ref)

    # TODO(synk): training utilities (fit/compile/predict/plot_history, EarlyStopping) are
    # host-side training loops, not part of the forward pass, and are not translated.
    print("KERNEL_OK")
</pallas_src>

<mosaic_0001>
module attributes {stable_mosaic.version = 11 : i64} {
  func.func @dcn_kernel(%arg0: i32, %arg1: memref<10x512xf32, #tpu.memory_space<vmem>>, %arg2: memref<40x24xf32, #tpu.memory_space<vmem>>, %arg3: memref<1x512xf32, #tpu.memory_space<vmem>>) attributes {dimension_semantics = [#tpu.dimension_semantics<arbitrary>], iteration_bounds = array<i64: 1>, scalar_prefetch = 0 : i64, scratch_operands = 0 : i64, tpu.core_type = #tpu.core_type<tc>, window_params = [{pipeline_mode = #tpu.pipeline_mode<synchronous>, transform_indices = @transform_0, window_bounds = array<i64: 10, 512>}, {pipeline_mode = #tpu.pipeline_mode<synchronous>, transform_indices = @transform_1, window_bounds = array<i64: 40, 24>}, {pipeline_mode = #tpu.pipeline_mode<synchronous>, transform_indices = @transform_2, window_bounds = array<i64: 1, 512>}]} {
    %c0 = arith.constant 0 : index
    %c0_0 = arith.constant 0 : index
    %0 = vector.load %arg1[%c0, %c0_0] : memref<10x512xf32, #tpu.memory_space<vmem>>, vector<8x512xf32>
    %c8 = arith.constant 8 : index
    %c0_1 = arith.constant 0 : index
    %1 = vector.load %arg1[%c8, %c0_1] : memref<10x512xf32, #tpu.memory_space<vmem>>, vector<2x512xf32>
    %2 = tpu.iota {dimensions = array<i32: 1>} : vector<8x512xi32>
    %c16_i32 = arith.constant 16 : i32
    %c0_i32 = arith.constant 0 : i32
    %3 = arith.cmpi eq, %c16_i32, %c0_i32 : i32
    %c1_i32 = arith.constant 1 : i32
    %4 = arith.select %3, %c1_i32, %c16_i32 : i32
    %5 = vector.broadcast %4 : i32 to vector<8x512xi32>
    %6 = arith.remsi %2, %5 : vector<8x512xi32>
    %c0_i32_2 = arith.constant 0 : i32
    %7 = vector.broadcast %c0_i32_2 : i32 to vector<8x512xi32>
    %8 = arith.cmpi ne, %6, %7 : vector<8x512xi32>
    %c0_i32_3 = arith.constant 0 : i32
    %9 = vector.broadcast %c0_i32_3 : i32 to vector<8x512xi32>
    %10 = arith.cmpi slt, %6, %9 : vector<8x512xi32>
    %c0_i32_4 = arith.constant 0 : i32
    %11 = arith.cmpi slt, %4, %c0_i32_4 : i32
    %12 = vector.broadcast %11 : i1 to vector<8x512xi1>
    %13 = vector.broadcast %12 : vector<8x512xi1> to vector<8x512xi1>
    %14 = arith.xori %10, %13 : vector<8x512xi1>
    %15 = arith.andi %14, %8 : vector<8x512xi1>
    %16 = vector.broadcast %4 : i32 to vector<8x512xi32>
    %17 = arith.addi %6, %16 : vector<8x512xi32>
    %18 = arith.select %15, %17, %6 : vector<8x512xi1>, vector<8x512xi32>
    %c0_5 = arith.constant 0 : index
    %c0_6 = arith.constant 0 : index
    %19 = vector.load %arg2[%c0_5, %c0_6] : memref<40x24xf32, #tpu.memory_space<vmem>>, vector<8x8xf32>
    %cst = arith.constant dense<0.000000e+00> : vector<8x512xf32>
    %20 = tpu.matmul %19, %0, %cst {dimension_numbers = #tpu.dot_dimension_numbers<[1], [0], [0], [1], [0, 0, 1, 1], [], []>} : vector<8x8xf32>, vector<8x512xf32>, vector<8x512xf32> -> vector<8x512xf32>
    %c0_7 = arith.constant 0 : index
    %c8_8 = arith.constant 8 : index
    %21 = vector.load %arg2[%c0_7, %c8_8] : memref<40x24xf32, #tpu.memory_space<vmem>>, vector<8x8xf32>
    %c511_i32 = arith.constant 511 : i32
    %22 = tpu.dynamic_rotate %0 by %c511_i32 dim 1 : vector<8x512xf32>, i32 -> vector<8x512xf32>
    %c15_i32 = arith.constant 15 : i32
    %23 = vector.broadcast %c15_i32 : i32 to vector<8x512xi32>
    %24 = arith.cmpi slt, %18, %23 : vector<8x512xi32>
    %cst_9 = arith.constant 0.000000e+00 : f32
    %25 = vector.broadcast %cst_9 : f32 to vector<8x512xf32>
    %26 = arith.select %24, %22, %25 : vector<8x512xi1>, vector<8x512xf32>
    %cst_10 = arith.constant dense<0.000000e+00> : vector<8x512xf32>
    %27 = tpu.matmul %21, %26, %cst_10 {dimension_numbers = #tpu.dot_dimension_numbers<[1], [0], [0], [1], [0, 0, 1, 1], [], []>} : vector<8x8xf32>, vector<8x512xf32>, vector<8x512xf32> -> vector<8x512xf32>
    %28 = arith.addf %20, %27 : vector<8x512xf32>
    %c0_11 = arith.constant 0 : index
    %c16 = arith.constant 16 : index
    %29 = vector.load %arg2[%c0_11, %c16] : memref<40x24xf32, #tpu.memory_space<vmem>>, vector<8x8xf32>
    %c510_i32 = arith.constant 510 : i32
    %30 = tpu.dynamic_rotate %0 by %c510_i32 dim 1 : vector<8x512xf32>, i32 -> vector<8x512xf32>
    %c14_i32 = arith.constant 14 : i32
    %31 = vector.broadcast %c14_i32 : i32 to vector<8x512xi32>
    %32 = arith.cmpi slt, %18, %31 : vector<8x512xi32>
    %cst_12 = arith.constant 0.000000e+00 : f32
    %33 = vector.broadcast %cst_12 : f32 to vector<8x512xf32>
    %34 = arith.select %32, %30, %33 : vector<8x512xi1>, vector<8x512xf32>
    %cst_13 = arith.constant dense<0.000000e+00> : vector<8x512xf32>
    %35 = tpu.matmul %29, %34, %cst_13 {dimension_numbers = #tpu.dot_dimension_numbers<[1], [0], [0], [1], [0, 0, 1, 1], [], []>} : vector<8x8xf32>, vector<8x512xf32>, vector<8x512xf32> -> vector<8x512xf32>
    %36 = arith.addf %28, %35 : vector<8x512xf32>
    %cst_14 = arith.constant 0.000000e+00 : f32
    %37 = vector.broadcast %cst_14 : f32 to vector<8x512xf32>
    %38 = arith.maximumf %36, %37 : vector<8x512xf32>
    %c8_15 = arith.constant 8 : index
    %c0_16 = arith.constant 0 : index
    %39 = vector.load %arg2[%c8_15, %c0_16] : memref<40x24xf32, #tpu.memory_space<vmem>>, vector<8x8xf32>
    %cst_17 = arith.constant dense<0.000000e+00> : vector<8x512xf32>
    %40 = tpu.matmul %39, %38, %cst_17 {dimension_numbers = #tpu.dot_dimension_numbers<[1], [0], [0], [1], [0, 0, 1, 1], [], []>} : vector<8x8xf32>, vector<8x512xf32>, vector<8x512xf32> -> vector<8x512xf32>
    %c8_18 = arith.constant 8 : index
    %c8_19 = arith.constant 8 : index
    %41 = vector.load %arg2[%c8_18, %c8_19] : memref<40x24xf32, #tpu.memory_space<vmem>>, vector<8x8xf32>
    %c510_i32_20 = arith.constant 510 : i32
    %42 = tpu.dynamic_rotate %38 by %c510_i32_20 dim 1 : vector<8x512xf32>, i32 -> vector<8x512xf32>
    %c14_i32_21 = arith.constant 14 : i32
    %43 = vector.broadcast %c14_i32_21 : i32 to vector<8x512xi32>
    %44 = arith.cmpi slt, %18, %43 : vector<8x512xi32>
    %cst_22 = arith.constant 0.000000e+00 : f32
    %45 = vector.broadcast %cst_22 : f32 to vector<8x512xf32>
    %46 = arith.select %44, %42, %45 : vector<8x512xi1>, vector<8x512xf32>
    %cst_23 = arith.constant dense<0.000000e+00> : vector<8x512xf32>
    %47 = tpu.matmul %41, %46, %cst_23 {dimension_numbers = #tpu.dot_dimension_numbers<[1], [0], [0], [1], [0, 0, 1, 1], [], []>} : vector<8x8xf32>, vector<8x512xf32>, vector<8x512xf32> -> vector<8x512xf32>
    %48 = arith.addf %40, %47 : vector<8x512xf32>
    %c8_24 = arith.constant 8 : index
    %c16_25 = arith.constant 16 : index
    %49 = vector.load %arg2[%c8_24, %c16_25] : memref<40x24xf32, #tpu.memory_space<vmem>>, vector<8x8xf32>
    %c508_i32 = arith.constant 508 : i32
    %50 = tpu.dynamic_rotate %38 by %c508_i32 dim 1 : vector<8x512xf32>, i32 -> vector<8x512xf32>
    %c12_i32 = arith.constant 12 : i32
    %51 = vector.broadcast %c12_i32 : i32 to vector<8x512xi32>
    %52 = arith.cmpi slt, %18, %51 : vector<8x512xi32>
    %cst_26 = arith.constant 0.000000e+00 : f32
    %53 = vector.broadcast %cst_26 : f32 to vector<8x512xf32>
    %54 = arith.select %52, %50, %53 : vector<8x512xi1>, vector<8x512xf32>
    %cst_27 = arith.constant dense<0.000000e+00> : vector<8x512xf32>
    %55 = tpu.matmul %49, %54, %cst_27 {dimension_numbers = #tpu.dot_dimension_numbers<[1], [0], [0], [1], [0, 0, 1, 1], [], []>} : vector<8x8xf32>, vector<8x512xf32>, vector<8x512xf32> -> vector<8x512xf32>
    %56 = arith.addf %48, %55 : vector<8x512xf32>
    %cst_28 = arith.constant 0.000000e+00 : f32
    %57 = vector.broadcast %cst_28 : f32 to vector<8x512xf32>
    %58 = arith.maximumf %56, %57 : vector<8x512xf32>
    %cst_29 = arith.constant 1.000000e+00 : f32
    %59 = vector.broadcast %cst_29 : f32 to vector<1x512xf32>
    %60 = tpu.concatenate %58, %1, %59 in 0 : vector<8x512xf32>, vector<2x512xf32>, vector<1x512xf32> -> vector<11x512xf32>
    %c16_30 = arith.constant 16 : index
    %c0_31 = arith.constant 0 : index
    %61 = vector.load %arg2[%c16_30, %c0_31] : memref<40x24xf32, #tpu.memory_space<vmem>>, vector<16x11xf32>
    %cst_32 = arith.constant dense<0.000000e+00> : vector<16x512xf32>
    %62 = tpu.matmul %61, %60, %cst_32 {dimension_numbers = #tpu.dot_dimension_numbers<[1], [0], [0], [1], [0, 0, 1, 1], [], []>} : vector<16x11xf32>, vector<11x512xf32>, vector<16x512xf32> -> vector<16x512xf32>
    %cst_33 = arith.constant 0.000000e+00 : f32
    %63 = vector.broadcast %cst_33 : f32 to vector<16x512xf32>
    %64 = arith.maximumf %62, %63 : vector<16x512xf32>
    %c32 = arith.constant 32 : index
    %c0_34 = arith.constant 0 : index
    %65 = vector.load %arg2[%c32, %c0_34] : memref<40x24xf32, #tpu.memory_space<vmem>>, vector<1x16xf32>
    %c32_35 = arith.constant 32 : index
    %c16_36 = arith.constant 16 : index
    %66 = vector.load %arg2[%c32_35, %c16_36] : memref<40x24xf32, #tpu.memory_space<vmem>>, vector<1x1xf32>
    %cst_37 = arith.constant dense<0.000000e+00> : vector<1x512xf32>
    %67 = tpu.matmul %65, %64, %cst_37 {dimension_numbers = #tpu.dot_dimension_numbers<[1], [0], [0], [1], [0, 0, 1, 1], [], []>} : vector<1x16xf32>, vector<16x512xf32>, vector<1x512xf32> -> vector<1x512xf32>
    %68 = vector.broadcast %66 : vector<1x1xf32> to vector<1x512xf32>
    %69 = arith.addf %67, %68 : vector<1x512xf32>
    %c0_38 = arith.constant 0 : index
    %c0_39 = arith.constant 0 : index
    %70 = vector.load %arg3[%c0_38, %c0_39] : memref<1x512xf32, #tpu.memory_space<vmem>>, vector<1x512xf32>
    tpu.vector_store %arg3[%c0_38, %c0_39], %69 {strides = array<i32>} : memref<1x512xf32, #tpu.memory_space<vmem>>, vector<1x512xf32>,
    return
  }
  func.func @transform_0(%arg0: i32) -> (i32, i32) {
    %c0_i32 = arith.constant 0 : i32
    %c0_i32_0 = arith.constant 0 : i32
    %c0_i32_1 = arith.constant 0 : i32
    return %c0_i32, %c0_i32_0 : i32, i32
  }
  func.func @transform_1(%arg0: i32) -> (i32, i32) {
    %c0_i32 = arith.constant 0 : i32
    %c0_i32_0 = arith.constant 0 : i32
    %c0_i32_1 = arith.constant 0 : i32
    return %c0_i32, %c0_i32_0 : i32, i32
  }
  func.func @transform_2(%arg0: i32) -> (i32, i32) {
    %c0_i32 = arith.constant 0 : i32
    %c0_i32_0 = arith.constant 0 : i32
    %c0_i32_1 = arith.constant 0 : i32
    return %c0_i32, %c0_i32_0 : i32, i32
  }
}

</mosaic_0001>

<bundles_post_ra>
// kernel: dcn_forward.1
= control target key start
LH: loop header
LB: loop body
LE: loop exit
PB: predicated region body
PF: predicated region fallthrough
CT: control target
= control target key end

     0   :  { %s974_s13 = smov 127   ;;  %s975_s20 = smov 120   ;;  %v19_v5 = vlaneseq  ;;  %vm97_vm3 = vcmask 64512   ;;  %s1157_s0 = inlined_call_operand.vmem [shape: f32[10,512], index: 0, kind: input, shape index: {}]   ;;  %s1158_s1 = inlined_call_operand.vmem [shape: f32[40,24], index: 1, kind: input, shape index: {}]   ;;  %s1159_s2 = inlined_call_operand.vmem [shape: f32[1,512], index: 2, kind: output, shape index: {}]  }
   0x1   :  { %v14_v0 = vld [vmem:[%s1157_s0 + $0x18] sm:$0xff]  ;;  %v11_v1 = vld [vmem:[%s1157_s0] sm:$0xff]  ;;  %v12_v2 = vld [vmem:[%s1157_s0 + $0x8] sm:$0xff]  ;;  %s976_s21 = smov 126   ;;  %s977_s22 = smov 112  }
   0x2   :  { %79 = vrot.lane.b32.xlu1 %v14_v0, %s974_s13  ;;  %73 = vrot.lane.b32.xlu0 %v11_v1, %s974_s13  ;;  %v72_v3 = vld [vmem:[%s1158_s1] sm:$0xff]  ;;  %v13_v4 = vld [vmem:[%s1157_s0 + $0x10] sm:$0xff]  ;;  %v1017_v6 = vand.u32 127, %v19_v5  ;;  %s978_s25 = smov 124  }
   0x3   :  { %75 = vrot.lane.b32.xlu2 %v12_v2, %s974_s13  ;;  %v375_v52 = vld [vmem:[%s1158_s1 + $0x8] sm:$0xff] }
   0x4   :  { %v23_v7 = vadd.s32 384, %v1017_v6  ;;  %v1021_v8 = vand.u32 15, %v1017_v6  ;;  %vm81_vm0 = vcmp.lt.s32.totalorder %v1017_v6, 127  ;;  %v21_v11 = vadd.s32 128, %v1017_v6 }
   0x5   :  { %v22_v12 = vadd.s32 256, %v1017_v6  ;;  %vm270_vm6 = vcmp.lt.s32.totalorder %v1017_v6, 126  ;;  %vm567_vm11 = vcmp.lt.s32.totalorder %v1017_v6, 124  ;;  %v16_v6 = vld [vmem:[%s1157_s0 + $0x28] sm:$0x3] }
   0x6   :  { %v1023_v9 = vand.u32 15, %v23_v7  ;;  %vm86_vm1 = vcmp.lt.s32.totalorder %v1021_v8, 15  ;;  %v1034_v17 = vand.u32 15, %v21_v11  ;;  %vm275_vm9 = vcmp.lt.s32.totalorder %v1021_v8, 14 }
   0x7   :  { %v1036_v18 = vand.u32 15, %v22_v12  ;;  %vm572_vm14 = vcmp.lt.s32.totalorder %v1021_v8, 12  ;;  %v15_v8 = vld [vmem:[%s1157_s0 + $0x20] sm:$0x3] }
   0x8   :  { %vm89_vm2 = vcmp.lt.s32.totalorder %v1023_v9, 15  ;;  %vm87_vm4 = vcmp.lt.s32.totalorder %v1034_v17, 15  ;;  %vm278_vm8 = vcmp.lt.s32.totalorder %v1023_v9, 14  ;;  %vm276_vm10 = vcmp.lt.s32.totalorder %v1034_v17, 14 }
   0x9   :  { %vm88_vm5 = vcmp.lt.s32.totalorder %v1036_v18, 15  ;;  %vm277_vm7 = vcmp.lt.s32.totalorder %v1036_v18, 14  ;;  %vm574_vm12 = vcmp.lt.s32.totalorder %v1036_v18, 12  ;;  %vm575_vm13 = vcmp.lt.s32.totalorder %v1023_v9, 12 }
   0xa   :  { %95 = vrot.lane.b32.xlu1 %v72_v3, %s975_s20  ;;  %77 = vrot.lane.b32.xlu0 %v13_v4, %s974_s13  ;;  %vm573_vm15 = vcmp.lt.s32.totalorder %v1034_v17, 12  ;;  %v18_v17 = vld [vmem:[%s1157_s0 + $0x38] sm:$0x3] }
   0xb   :  { %262 = vrot.lane.b32.xlu2 %v11_v1, %s976_s21 }
  0x12   :  { %268 = vrot.lane.b32.xlu1 %v14_v0, %s976_s21  ;;  %266 = vrot.lane.b32.xlu0 %v13_v4, %s976_s21 }
  0x13   :  { %283 = vrot.lane.b32.xlu2 %v72_v3, %s977_s22 }
  0x1a   :  { %264 = vrot.lane.b32.xlu0 %v12_v2, %s976_s21 }
  0x5d   :  { %v76_v10 = vpop.permute.xlu2 %75 }
  0x65   :  { %v263_v23 = vpop.permute.xlu2 %262 }
  0x6d   :  { %v284_v28 = vpop.permute.xlu2 %283 }
  0x74   :  { %v80_v13 = vpop.permute.xlu1 %79  ;;  %v74_v14 = vpop.permute.xlu0 %73 }
  0x75   :  { %v84_v15 = vsel %vm81_vm0, %v74_v14, %v76_v10  ;;  %v85_v16 = vsel %vm81_vm0, %v80_v13, %v74_v14 }
  0x76   :  { %910 = vmatpush.msk.msra.mxu0 %vm86_vm1, %v84_v15  ;;  %916 = vmatpush.msk.msra.mxu3 %vm89_vm2, %v85_v16  ;;  %vm686_vm1 = vcmask 1042432   ;;  %v17_v16 = vld [vmem:[%s1157_s0 + $0x30] sm:$0x3]  ;;  %vm679_vm2 = vcmask 89088  }
  0x78   :  { %197 = vmatpush.msrb.mxu0 %v11_v1  ;;  %257 = vmatpush.msrb.mxu3 %v14_v0 }
  0x7c   :  { %v96_v19 = vpop.permute.xlu1 %95  ;;  %v78_v20 = vpop.permute.xlu0 %77 }
  0x7d   :  { %911 = vmatmul.msk.f32.vlgmr.msra.gmra.mxu0 %vm97_vm3, %v96_v19  ;;  %917 = vmatmul.msk.f32.vlgmr.msra.gmra.mxu3 %vm97_vm3, %v96_v19  ;;  %v83_v21 = vsel %vm81_vm0, %v76_v10, %v78_v20  ;;  %v82_v22 = vsel %vm81_vm0, %v78_v20, %v80_v13  ;;  %vm672_vm0 = vcmask 1041408  }
  0x7e   :  { %912 = vmatpush.msk.msra.mxu1 %vm87_vm4, %v83_v21  ;;  %914 = vmatpush.msk.msra.mxu2 %vm88_vm5, %v82_v22  ;;  %v673_v14 = vsel %vm672_vm0, %v15_v8, 1.0  ;;  %v674_v15 = vsel %vm672_vm0, %v16_v6, 1.0  ;;  %v675_v18 = vsel %vm672_vm0, %v17_v16, 1.0  ;;  %vm897_vm4 = vcmask 1042434  }
  0x7f   :  { %913 = vmatmul.msk.f32.vlgmr.msra.gmra.mxu1 %vm97_vm3, %v96_v19  ;;  %915 = vmatmul.msk.f32.vlgmr.msra.gmra.mxu2 %vm97_vm3, %v96_v19  ;;  %v676_v19 = vsel %vm672_vm0, %v18_v17, 1.0  ;;  %vm895_vm5 = vcmask 1040384  }
  0x80   :  { %237 = vmatpush.msrb.mxu2 %v13_v4  ;;  %217 = vmatpush.msrb.mxu1 %v12_v2 }
  0x84   :  { %v269_v24 = vpop.permute.xlu1 %268  ;;  %v267_v25 = vpop.permute.xlu0 %266 }
  0x85   :  { %v274_v26 = vsel %vm270_vm6, %v269_v24, %v263_v23  ;;  %v271_v27 = vsel %vm270_vm6, %v267_v25, %v269_v24  ;;  %918 = vmatmul.msk.f32.vlgmr.msrb.gmra.mxu0 %vm97_vm3, %v72_v3  ;;  %921 = vmatmul.msk.f32.vlgmr.msrb.gmra.mxu3 %vm97_vm3, %v72_v3 }
  0x86   :  { %926 = vmatpush.msk.msra.mxu2 %vm277_vm7, %v271_v27  ;;  %928 = vmatpush.msk.msra.mxu3 %vm278_vm8, %v274_v26 }
  0x87   :  { %919 = vmatmul.msk.f32.vlgmr.msrb.gmra.mxu1 %vm97_vm3, %v72_v3  ;;  %920 = vmatmul.msk.f32.vlgmr.msrb.gmra.mxu2 %vm97_vm3, %v72_v3 }
  0x8c   :  { %v265_v29 = vpop.permute.xlu0 %264 }
  0x8d   :  { %v272_v30 = vsel %vm270_vm6, %v265_v29, %v267_v25  ;;  %v273_v31 = vsel %vm270_vm6, %v263_v23, %v265_v29  ;;  %929 = vmatmul.msk.f32.vlgmr.msra.gmra.mxu3 %vm97_vm3, %v284_v28 }
  0x8e   :  { %922 = vmatpush.msk.msra.mxu0 %vm275_vm9, %v273_v31  ;;  %924 = vmatpush.msk.msra.mxu1 %vm276_vm10, %v272_v30 }
  0x8f   :  { %923 = vmatmul.msk.f32.vlgmr.msra.gmra.mxu0 %vm97_vm3, %v284_v28  ;;  %925 = vmatmul.msk.f32.vlgmr.msra.gmra.mxu1 %vm97_vm3, %v284_v28 }
  0x90   :  { %927 = vmatmul.msk.f32.vlgmr.msra.gmra.mxu2 %vm97_vm3, %v284_v28 }
  0xfa   :  { %v117_v32 = vpop.f32.mrf.mxu0 }
  0xfc   :  { %v137_v38 = vpop.f32.mrf.mxu1 }
 0x100   :  { %v177_v33 = vpop.f32.mrf.mxu3 }
 0x102   :  { %v157_v34 = vpop.f32.mrf.mxu2  ;;  %v199_v35 = vpop.f32.mrf.mxu0 }
 0x103   :  { %v200_v39 = vadd.f32 %v199_v35, %v117_v32 }
 0x104   :  { %v219_v50 = vpop.f32.mrf.mxu1 }
 0x105   :  { %v220_v54 = vadd.f32 %v219_v50, %v137_v38 }
 0x108   :  { %v259_v36 = vpop.f32.mrf.mxu3 }
 0x109   :  { %v260_v42 = vadd.f32 %v259_v36, %v177_v33 }
 0x10a   :  { %v239_v37 = vpop.f32.mrf.mxu2 }
 0x10b   :  { %v240_v46 = vadd.f32 %v239_v37, %v157_v34 }
 0x10c   :  { %v304_v40 = vpop.f32.mrf.mxu0  ;;  %v324_v53 = vpop.f32.mrf.mxu1 }
 0x10d   :  { %v367_v41 = vadd.f32 %v304_v40, %v200_v39  ;;  %v368_v55 = vadd.f32 %v324_v53, %v220_v54 }
 0x10f   :  { %v371_v43 = vmax.f32 %v367_v41, 0.0  ;;  %v372_v56 = vmax.f32 %v368_v55, 0.0 }
 0x110   :  { %v364_v44 = vpop.f32.mrf.mxu3 }
 0x111   :  { %v370_v45 = vadd.f32 %v364_v44, %v260_v42  ;;  %376 = vrot.lane.b32.xlu1 %v371_v43, %s976_s21  ;;  %v677_v42 = vld [vmem:[%s1158_s1 + $0x10] sm:$0xff] }
 0x113   :  { %v374_v47 = vmax.f32 %v370_v45, 0.0  ;;  %v344_v48 = vpop.f32.mrf.mxu2  ;;  %v678_v45 = vld [vmem:[%s1158_s1 + $0x18] sm:$0xff] }
 0x114   :  { %v369_v49 = vadd.f32 %v344_v48, %v240_v46  ;;  %v799_v46 = vld [vmem:[%s1158_s1 + $0x20] sm:$0x1] }
 0x115   :  { %382 = vrot.lane.b32.xlu0 %v374_v47, %s976_s21 }
 0x116   :  { %v373_v51 = vmax.f32 %v369_v49, 0.0 }
 0x118   :  { %380 = vrot.lane.b32.xlu2 %v373_v51, %s976_s21 }
 0x119   :  { %393 = vrot.lane.b32.xlu1 %v375_v52, %s975_s20 }
 0x11d   :  { %563 = vrot.lane.b32.xlu0 %v373_v51, %s978_s25 }
 0x120   :  { %559 = vrot.lane.b32.xlu2 %v371_v43, %s978_s25 }
 0x121   :  { %565 = vrot.lane.b32.xlu1 %v374_v47, %s978_s25 }
 0x125   :  { %580 = vrot.lane.b32.xlu0 %v375_v52, %s977_s22 }
 0x128   :  { %378 = vrot.lane.b32.xlu2 %v372_v56, %s976_s21 }
 0x129   :  { %561 = vrot.lane.b32.xlu1 %v372_v56, %s978_s25 }
 0x172   :  { %v381_v57 = vpop.permute.xlu2 %380 }
 0x17a   :  { %v560_v58 = vpop.permute.xlu2 %559 }
 0x182   :  { %v379_v59 = vpop.permute.xlu2 %378 }
 0x183   :  { %v385_v60 = vsel %vm270_vm6, %v379_v59, %v381_v57  ;;  %v377_v61 = vpop.permute.xlu1 %376 }
 0x184   :  { %v386_v62 = vsel %vm270_vm6, %v377_v61, %v379_v59  ;;  %932 = vmatpush.msk.msrb.mxu1 %vm276_vm10, %v385_v60 }
 0x185   :  { %930 = vmatpush.msk.msrb.mxu0 %vm275_vm9, %v386_v62 }
 0x186   :  { %514 = vmatpush.msra.mxu1 %v372_v56 }
 0x187   :  { %494 = vmatpush.msra.mxu0 %v371_v43  ;;  %v383_v63 = vpop.permute.xlu0 %382 }
 0x188   :  { %v384_v0 = vsel %vm270_vm6, %v381_v57, %v383_v63  ;;  %v387_v1 = vsel %vm270_vm6, %v383_v63, %v377_v61  ;;  %vm903_vm6 = vcmp.lt.s32.totalorder %v19_v5, 512 }
 0x189   :  { %934 = vmatpush.msk.msrb.mxu2 %vm277_vm7, %v384_v0  ;;  %936 = vmatpush.msk.msrb.mxu3 %vm278_vm8, %v387_v1 }
 0x18b   :  { %534 = vmatpush.msra.mxu2 %v373_v51  ;;  %554 = vmatpush.msra.mxu3 %v374_v47  ;;  %v394_v2 = vpop.permute.xlu1 %393  ;;  %v979_v47 = vmov 16  }
 0x18c   :  { %931 = vmatmul.msk.f32.vlgmr.msrb.gmra.mxu0 %vm97_vm3, %v394_v2  ;;  %933 = vmatmul.msk.f32.vlgmr.msrb.gmra.mxu1 %vm97_vm3, %v394_v2 }
 0x18d   :  { %935 = vmatmul.msk.f32.vlgmr.msrb.gmra.mxu2 %vm97_vm3, %v394_v2  ;;  %937 = vmatmul.msk.f32.vlgmr.msrb.gmra.mxu3 %vm97_vm3, %v394_v2 }
 0x18e   :  { %972 = vset.pattern.permute.xlu2 %v979_v47  ;;  %973 = vset.pattern.permute.xlu0 %v979_v47 }
 0x18f   :  { %v564_v3 = vpop.permute.xlu0 %563  ;;  %802 = vperm.xlu2 %972, %v799_v46  }
 0x193   :  { %v566_v4 = vpop.permute.xlu1 %565 }
 0x194   :  { %v568_v7 = vsel %vm567_vm11, %v564_v3, %v566_v4  ;;  %v571_v10 = vsel %vm567_vm11, %v566_v4, %v560_v58  ;;  %938 = vmatmul.msk.f32.vlgmr.msra.gmra.mxu0 %vm97_vm3, %v375_v52  ;;  %939 = vmatmul.msk.f32.vlgmr.msra.gmra.mxu1 %vm97_vm3, %v375_v52 }
 0x195   :  { %940 = vmatmul.msk.f32.vlgmr.msra.gmra.mxu2 %vm97_vm3, %v375_v52  ;;  %941 = vmatmul.msk.f32.vlgmr.msra.gmra.mxu3 %vm97_vm3, %v375_v52 }
 0x196   :  { %946 = vmatpush.msk.msrb.mxu2 %vm574_vm12, %v568_v7  ;;  %948 = vmatpush.msk.msrb.mxu3 %vm575_vm13, %v571_v10 }
 0x197   :  { %v581_v11 = vpop.permute.xlu0 %580 }
 0x198   :  { %956 = vmatpush.msk.msra.mxu2 %vm686_vm1, %v675_v18  ;;  %959 = vmatpush.msk.msra.mxu3 %vm686_vm1, %v676_v19 }
 0x19b   :  { %v562_v12 = vpop.permute.xlu1 %561 }
 0x19c   :  { %v569_v9 = vsel %vm567_vm11, %v562_v12, %v564_v3  ;;  %v570_v13 = vsel %vm567_vm11, %v560_v58, %v562_v12 }
 0x19d   :  { %947 = vmatmul.msk.f32.vlgmr.msrb.gmra.mxu2 %vm97_vm3, %v581_v11  ;;  %949 = vmatmul.msk.f32.vlgmr.msrb.gmra.mxu3 %vm97_vm3, %v581_v11 }
 0x19e   :  { %942 = vmatpush.msk.msrb.mxu0 %vm572_vm14, %v570_v13  ;;  %944 = vmatpush.msk.msrb.mxu1 %vm573_vm15, %v569_v9 }
 0x19f   :  { %943 = vmatmul.msk.f32.vlgmr.msrb.gmra.mxu0 %vm97_vm3, %v581_v11  ;;  %945 = vmatmul.msk.f32.vlgmr.msrb.gmra.mxu1 %vm97_vm3, %v581_v11  ;;  %vm805_vm3 = vcmask 130048  }
 0x1a0   :  { %950 = vmatpush.msk.msra.mxu0 %vm686_vm1, %v673_v14  ;;  %953 = vmatpush.msk.msra.mxu1 %vm686_vm1, %v674_v15 }
 0x1e9   :  { %v803_v0 = vpop.permute.xlu2 %802 }
 0x209   :  { %v414_v20 = vpop.f32.mrf.mxu0  ;;  %v434_v21 = vpop.f32.mrf.mxu1 }
 0x210   :  { %v454_v22 = vpop.f32.mrf.mxu2  ;;  %v474_v23 = vpop.f32.mrf.mxu3 }
 0x211   :  { %v496_v24 = vpop.f32.mrf.mxu0  ;;  %v516_v25 = vpop.f32.mrf.mxu1 }
 0x212   :  { %v497_v28 = vadd.f32 %v496_v24, %v414_v20  ;;  %v517_v29 = vadd.f32 %v516_v25, %v434_v21 }
 0x218   :  { %v536_v26 = vpop.f32.mrf.mxu2  ;;  %v556_v27 = vpop.f32.mrf.mxu3 }
 0x219   :  { %v537_v34 = vadd.f32 %v536_v26, %v454_v22  ;;  %v557_v35 = vadd.f32 %v556_v27, %v474_v23 }
 0x21c   :  { %v601_v30 = vpop.f32.mrf.mxu0  ;;  %v621_v31 = vpop.f32.mrf.mxu1 }
 0x21d   :  { %v664_v32 = vadd.f32 %v601_v30, %v497_v28  ;;  %v665_v33 = vadd.f32 %v621_v31, %v517_v29 }
 0x21f   :  { %v668_v36 = vmax.f32 %v664_v32, 0.0  ;;  %v669_v37 = vmax.f32 %v665_v33, 0.0 }
 0x220   :  { %v641_v38 = vpop.f32.mrf.mxu2  ;;  %v661_v39 = vpop.f32.mrf.mxu3 }
 0x221   :  { %v666_v40 = vadd.f32 %v641_v38, %v537_v34  ;;  %v667_v41 = vadd.f32 %v661_v39, %v557_v35  ;;  %714 = vmatpush.msra.mxu0 %v668_v36  ;;  %737 = vmatpush.msra.mxu1 %v669_v37 }
 0x222   :  { %954 = vmatmul.msk.f32.vlgmr.msra.gmra.mxu1 %vm679_vm2, %v677_v42  ;;  %951 = vmatmul.msk.f32.vlgmr.msra.gmra.mxu0 %vm679_vm2, %v677_v42 }
 0x223   :  { %v670_v43 = vmax.f32 %v666_v40, 0.0  ;;  %v671_v44 = vmax.f32 %v667_v41, 0.0 }
 0x225   :  { %760 = vmatpush.msra.mxu2 %v670_v43  ;;  %783 = vmatpush.msra.mxu3 %v671_v44 }
 0x226   :  { %957 = vmatmul.msk.f32.vlgmr.msra.gmra.mxu2 %vm679_vm2, %v677_v42  ;;  %960 = vmatmul.msk.f32.vlgmr.msra.gmra.mxu3 %vm679_vm2, %v677_v42 }
 0x22a   :  { %955 = vmatmul.msk.f32.gmra.mxu1 %vm679_vm2, %v678_v45  ;;  %952 = vmatmul.msk.f32.gmra.mxu0 %vm679_vm2, %v678_v45 }
 0x22e   :  { %958 = vmatmul.msk.f32.gmra.mxu2 %vm679_vm2, %v678_v45  ;;  %961 = vmatmul.msk.f32.gmra.mxu3 %vm679_vm2, %v678_v45 }
 0x29f   :  { %v739_v48 = vpop.f32.mrf.mxu1  ;;  %v716_v49 = vpop.f32.mrf.mxu0 }
 0x2a0   :  { %v792_v52 = vmax.f32 %v739_v48, 0.0  ;;  %v791_v53 = vmax.f32 %v716_v49, 0.0 }
 0x2a7   :  { %v742_v50 = vpop.f32.mrf.mxu1  ;;  %v719_v51 = vpop.f32.mrf.mxu0 }
 0x2a8   :  { %v796_v54 = vmax.f32 %v742_v50, 0.0  ;;  %v795_v55 = vmax.f32 %v719_v51, 0.0 }
 0x2a9   :  { %v762_v56 = vpop.f32.mrf.mxu2  ;;  %v785_v57 = vpop.f32.mrf.mxu3 }
 0x2aa   :  { %842 = vmatpush.msrb.mxu1 %v796_v54  ;;  %822 = vmatpush.msrb.mxu0 %v795_v55  ;;  %v793_v62 = vmax.f32 %v762_v56, 0.0  ;;  %v794_v63 = vmax.f32 %v785_v57, 0.0 }
 0x2ac   :  { %843 = vmatpush.msrb.mxu1 %v792_v52  ;;  %823 = vmatpush.msrb.mxu0 %v791_v53 }
 0x2ad   :  { %963 = vmatmul.msk.f32.vlgmr.msrb.gmra.mxu1 %vm805_vm3, %v799_v46  ;;  %962 = vmatmul.msk.f32.vlgmr.msrb.gmra.mxu0 %vm805_vm3, %v799_v46 }
 0x2b1   :  { %v765_v58 = vpop.f32.mrf.mxu2  ;;  %v788_v59 = vpop.f32.mrf.mxu3 }
 0x2b2   :  { %v797_v60 = vmax.f32 %v765_v58, 0.0  ;;  %v798_v61 = vmax.f32 %v788_v59, 0.0 }
 0x2b4   :  { %862 = vmatpush.msrb.mxu2 %v797_v60  ;;  %882 = vmatpush.msrb.mxu3 %v798_v61 }
 0x2b6   :  { %863 = vmatpush.msrb.mxu2 %v793_v62  ;;  %883 = vmatpush.msrb.mxu3 %v794_v63 }
 0x2b7   :  { %964 = vmatmul.msk.f32.vlgmr.msrb.gmra.mxu2 %vm805_vm3, %v799_v46  ;;  %965 = vmatmul.msk.f32.vlgmr.msrb.gmra.mxu3 %vm805_vm3, %v799_v46 }
 0x32a   :  { %v845_v1 = vpop.f32.mrf.mxu1  ;;  %v825_v3 = vpop.f32.mrf.mxu0 }
 0x32b   :  { %v846_v2 = vadd.f32 %v845_v1, %v803_v0  ;;  %v826_v9 = vadd.f32 %v825_v3, %v803_v0 }
 0x32d   :  { %v892_v10 = vrot.slane %v846_v2, 7 }
 0x32f   :  { %v896_v14 = vsel %vm895_vm5, %v826_v9, %v892_v10 }
 0x33a   :  { %v865_v4 = vpop.f32.mrf.mxu2  ;;  %v885_v7 = vpop.f32.mrf.mxu3 }
 0x33b   :  { %v866_v11 = vadd.f32 %v865_v4, %v803_v0  ;;  %v886_v12 = vadd.f32 %v885_v7, %v803_v0 }
 0x33d   :  { %v893_v13 = vrot.slane %v866_v11, 6  ;;  %v894_v8 = vrot.slane %v886_v12, 5 }
 0x33f   :  { %v898_v6 = vsel %vm897_vm4, %v893_v13, %v894_v8 }
 0x340   :  { %v899_v15 = vsel %vm672_vm0, %v896_v14, %v898_v6 }
 0x341   :  { %905 = vst.msk [vmem:[%s1159_s2] sm:$0xf] %vm903_vm6, %v899_v15 }

</bundles_post_ra>
